<compile_context>
chip_gen: v7x
topology: tpu7x:2x2x1
jax: 0.10.0
libtpu: 0.0.40
codegen_flags: <defaults>
</compile_context>

<pallas_src>
import jax
import jax.numpy as jnp
from jax.experimental import pallas as pl
from jax.experimental.pallas import tpu as pltpu

LANE = 128


def _round_up(x, m):
    return ((x + m - 1) // m) * m


def _pad2(x, rows, cols):
    return jnp.pad(x, ((0, rows - x.shape[0]), (0, cols - x.shape[1])))


def mlp_kernel(u_ref, i_ref, w1u_ref, w1i_ref, b1_ref, w2_ref, b2_ref,
               w3_ref, b3_ref, o_ref):
    # Layer 1: h1 = [u, i] @ W1 + b1 without the concat (W1 pre-split).
    h1 = jnp.dot(u_ref[...], w1u_ref[...], preferred_element_type=jnp.float32)
    h1 = h1 + jnp.dot(i_ref[...], w1i_ref[...],
                      preferred_element_type=jnp.float32)
    h1 = jnp.maximum(h1 + b1_ref[...], 0.0)                      # f32 VPU math

    # Layer 2: Linear(2F -> F) + ReLU (bf16 MXU inputs, f32 accumulate).
    h2 = jnp.dot(h1.astype(jnp.bfloat16), w2_ref[...],
                 preferred_element_type=jnp.float32)
    h2 = jnp.maximum(h2 + b2_ref[...], 0.0)

    # Layer 3: Linear(F -> 1) + Sigmoid, computed as a transposed mat-vec so
    # the per-example scalars land lane-major: (1, H2) @ (H2, TB) -> (1, TB).
    h2t = jnp.transpose(h2)                                      # XLU transpose
    h3 = jnp.dot(w3_ref[...], h2t, preferred_element_type=jnp.float32)
    o_ref[...] = jax.nn.sigmoid(h3 + b3_ref[...])


def prepare_params(params):
    """One-time prep: split W1, zero-pad feature dims to 128 lanes, cast the
    large operands (embedding tables, weight matrices) to bf16."""
    f2 = params["user_emb"].shape[1]          # 2 * n_factors
    f1 = params["w2"].shape[1]                # n_factors
    E = _round_up(f2, LANE)                   # padded embedding width
    H1 = _round_up(f2, LANE)                  # padded hidden-1 width
    H2 = _round_up(f1, LANE)                  # padded hidden-2 width

    w1u = params["w1"][:f2]                   # user half of the concat
    w1i = params["w1"][f2:]                   # item half of the concat
    bf16 = jnp.bfloat16
    n_u = params["user_emb"].shape[0]
    n_i = params["item_emb"].shape[0]
    return {
        "user_emb": _pad2(params["user_emb"], n_u, E).astype(bf16),
        "item_emb": _pad2(params["item_emb"], n_i, E).astype(bf16),
        "w1u": _pad2(w1u, E, H1).astype(bf16),
        "w1i": _pad2(w1i, E, H1).astype(bf16),
        "b1": _pad2(params["b1"], 1, H1),                 # biases stay f32
        "w2": _pad2(params["w2"], H1, H2).astype(bf16),
        "b2": _pad2(params["b2"], 1, H2),
        "w3": _pad2(params["w3"].T, 1, H2),               # row vector, f32
        "b3": params["b3"],                               # (1, 1) f32
    }


def mlp_forward(user, item, kparams, *, tb_max=2048):
    """user/item: int32 index vectors (B,).  Returns squeezed sigmoid scores."""
    B = user.shape[0]
    # Batch tile: lane-aligned, large enough to amortize per-step overhead but
    # sized so double-buffered bf16 tiles stay well inside v7x's 32 MiB scoped
    # VMEM (sweep tb_max per chip).
    TB = min(tb_max, _round_up(B, LANE))
    B_pad = _round_up(B, TB)
    if B_pad != B:
        user = jnp.pad(user, (0, B_pad - B))
        item = jnp.pad(item, (0, B_pad - B))

    # Embedding gather on the bf16 padded tables (XLA glue).
    # TODO(synk): fuse the gather into the kernel (scalar-prefetched indices +
    # DMA gather from HBM tables) to remove the extra HBM round trip.
    u_emb = jnp.take(kparams["user_emb"], user, axis=0)    # (B_pad, E) bf16
    i_emb = jnp.take(kparams["item_emb"], item, axis=0)    # (B_pad, E) bf16

    E = u_emb.shape[1]
    H1 = kparams["w1u"].shape[1]
    H2 = kparams["w2"].shape[1]

    def const(shape):
        return pl.BlockSpec(shape, lambda i: (0, 0))       # VMEM-resident

    out = pl.pallas_call(
        mlp_kernel,
        out_shape=jax.ShapeDtypeStruct((1, B_pad), jnp.float32),
        grid=(B_pad // TB,),
        in_specs=[
            pl.BlockSpec((TB, E), lambda i: (i, 0)),       # u_emb tile
            pl.BlockSpec((TB, E), lambda i: (i, 0)),       # i_emb tile
            const((E, H1)),                                 # w1u
            const((E, H1)),                                 # w1i
            const((1, H1)),                                 # b1
            const((H1, H2)),                                # w2
            const((1, H2)),                                 # b2
            const((1, H2)),                                 # w3 (row)
            const((1, 1)),                                  # b3
        ],
        out_specs=pl.BlockSpec((1, TB), lambda i: (0, i)),  # lane-dense output
        compiler_params=pltpu.CompilerParams(
            dimension_semantics=("parallel",),              # 2 TCs on v7x
            vmem_limit_bytes=32 * 1024 * 1024),
    )(u_emb, i_emb, kparams["w1u"], kparams["w1i"], kparams["b1"],
      kparams["w2"], kparams["b2"], kparams["w3"], kparams["b3"])

    # torch.squeeze semantics (drops all size-1 dims).
    return jnp.squeeze(out[0, :B])


def init_params(key, n_users, n_items, n_factors):
    """Deterministic synthetic parameter init (shapes match the nn.Module)."""
    ks = jax.random.split(key, 8)
    f = n_factors
    return {
        "user_emb": jax.random.normal(ks[0], (n_users, 2 * f), jnp.float32),
        "item_emb": jax.random.normal(ks[1], (n_items, 2 * f), jnp.float32),
        # weights stored as (in, out) so forward is x @ W + b
        "w1": jax.random.normal(ks[2], (4 * f, 2 * f), jnp.float32) * 0.1,
        "b1": jax.random.normal(ks[3], (1, 2 * f), jnp.float32) * 0.1,
        "w2": jax.random.normal(ks[4], (2 * f, f), jnp.float32) * 0.1,
        "b2": jax.random.normal(ks[5], (1, f), jnp.float32) * 0.1,
        "w3": jax.random.normal(ks[6], (f, 1), jnp.float32) * 0.1,
        "b3": jax.random.normal(ks[7], (1, 1), jnp.float32) * 0.1,
    }


def reference_forward(user, item, params):
    """Pure-JAX f32 reference replicating the PyTorch forward."""
    x = jnp.concatenate(
        [jnp.take(params["user_emb"], user, axis=0),
         jnp.take(params["item_emb"], item, axis=0)], axis=1)
    x = jnp.maximum(x @ params["w1"] + params["b1"], 0.0)
    x = jnp.maximum(x @ params["w2"] + params["b2"], 0.0)
    x = jax.nn.sigmoid(x @ params["w3"] + params["b3"])
    return jnp.squeeze(x)


if __name__ == "__main__":
    n_users, n_items, n_factors = 10, 12, 20
    batch = 8

    key = jax.random.PRNGKey(0)
    pkey, ukey, ikey = jax.random.split(key, 3)
    params = init_params(pkey, n_users, n_items, n_factors)
    kparams = prepare_params(params)

    user = jax.random.randint(ukey, (batch,), 0, n_users, dtype=jnp.int32)
    item = jax.random.randint(ikey, (batch,), 0, n_items, dtype=jnp.int32)

    out = jax.block_until_ready(mlp_forward(user, item, kparams))
    ref = jax.block_until_ready(reference_forward(user, item, params))

    assert out.shape == (batch,), out.shape
    # bf16 matmul inputs -> relaxed tolerance vs f32 reference.
    assert jnp.allclose(out, ref, atol=3e-2, rtol=3e-2), (out, ref)
    print("KERNEL_OK")
</pallas_src>

<mosaic_0001>
module attributes {stable_mosaic.version = 11 : i64} {
  func.func @mlp_kernel(%arg0: i32, %arg1: memref<128x128xbf16, #tpu.memory_space<vmem>>, %arg2: memref<128x128xbf16, #tpu.memory_space<vmem>>, %arg3: memref<128x128xbf16, #tpu.memory_space<vmem>>, %arg4: memref<128x128xbf16, #tpu.memory_space<vmem>>, %arg5: memref<1x128xf32, #tpu.memory_space<vmem>>, %arg6: memref<128x128xbf16, #tpu.memory_space<vmem>>, %arg7: memref<1x128xf32, #tpu.memory_space<vmem>>, %arg8: memref<1x128xf32, #tpu.memory_space<vmem>>, %arg9: memref<1x1xf32, #tpu.memory_space<vmem>>, %arg10: memref<1x128xf32, #tpu.memory_space<vmem>>) attributes {dimension_semantics = [#tpu.dimension_semantics<parallel>], iteration_bounds = array<i64: 1>, scalar_prefetch = 0 : i64, scratch_operands = 0 : i64, tpu.core_type = #tpu.core_type<tc>, window_params = [{transform_indices = @transform_0, window_bounds = array<i64: 128, 128>}, {transform_indices = @transform_1, window_bounds = array<i64: 128, 128>}, {pipeline_mode = #tpu.pipeline_mode<synchronous>, transform_indices = @transform_2, window_bounds = array<i64: 128, 128>}, {pipeline_mode = #tpu.pipeline_mode<synchronous>, transform_indices = @transform_3, window_bounds = array<i64: 128, 128>}, {pipeline_mode = #tpu.pipeline_mode<synchronous>, transform_indices = @transform_4, window_bounds = array<i64: 1, 128>}, {pipeline_mode = #tpu.pipeline_mode<synchronous>, transform_indices = @transform_5, window_bounds = array<i64: 128, 128>}, {pipeline_mode = #tpu.pipeline_mode<synchronous>, transform_indices = @transform_6, window_bounds = array<i64: 1, 128>}, {pipeline_mode = #tpu.pipeline_mode<synchronous>, transform_indices = @transform_7, window_bounds = array<i64: 1, 128>}, {pipeline_mode = #tpu.pipeline_mode<synchronous>, transform_indices = @transform_8, window_bounds = array<i64: 1, 1>}, {transform_indices = @transform_9, window_bounds = array<i64: 1, 128>}]} {
    %c0 = arith.constant 0 : index
    %c0_0 = arith.constant 0 : index
    %0 = vector.load %arg1[%c0, %c0_0] : memref<128x128xbf16, #tpu.memory_space<vmem>>, vector<128x128xbf16>
    %c0_1 = arith.constant 0 : index
    %c0_2 = arith.constant 0 : index
    %1 = vector.load %arg3[%c0_1, %c0_2] : memref<128x128xbf16, #tpu.memory_space<vmem>>, vector<128x128xbf16>
    %cst = arith.constant dense<0.000000e+00> : vector<128x128xf32>
    %2 = tpu.matmul %0, %1, %cst {dimension_numbers = #tpu.dot_dimension_numbers<[1], [0], [0], [1], [0, 0, 1, 1], [], []>} : vector<128x128xbf16>, vector<128x128xbf16>, vector<128x128xf32> -> vector<128x128xf32>
    %c0_3 = arith.constant 0 : index
    %c0_4 = arith.constant 0 : index
    %3 = vector.load %arg2[%c0_3, %c0_4] : memref<128x128xbf16, #tpu.memory_space<vmem>>, vector<128x128xbf16>
    %c0_5 = arith.constant 0 : index
    %c0_6 = arith.constant 0 : index
    %4 = vector.load %arg4[%c0_5, %c0_6] : memref<128x128xbf16, #tpu.memory_space<vmem>>, vector<128x128xbf16>
    %cst_7 = arith.constant dense<0.000000e+00> : vector<128x128xf32>
    %5 = tpu.matmul %3, %4, %cst_7 {dimension_numbers = #tpu.dot_dimension_numbers<[1], [0], [0], [1], [0, 0, 1, 1], [], []>} : vector<128x128xbf16>, vector<128x128xbf16>, vector<128x128xf32> -> vector<128x128xf32>
    %6 = arith.addf %2, %5 : vector<128x128xf32>
    %c0_8 = arith.constant 0 : index
    %c0_9 = arith.constant 0 : index
    %7 = vector.load %arg5[%c0_8, %c0_9] : memref<1x128xf32, #tpu.memory_space<vmem>>, vector<1x128xf32>
    %8 = vector.broadcast %7 : vector<1x128xf32> to vector<128x128xf32>
    %9 = arith.addf %6, %8 : vector<128x128xf32>
    %cst_10 = arith.constant 0.000000e+00 : f32
    %10 = vector.broadcast %cst_10 : f32 to vector<128x128xf32>
    %11 = arith.maximumf %9, %10 : vector<128x128xf32>
    %12 = arith.truncf %11 : vector<128x128xf32> to vector<128x128xbf16>
    %c0_11 = arith.constant 0 : index
    %c0_12 = arith.constant 0 : index
    %13 = vector.load %arg6[%c0_11, %c0_12] : memref<128x128xbf16, #tpu.memory_space<vmem>>, vector<128x128xbf16>
    %cst_13 = arith.constant dense<0.000000e+00> : vector<128x128xf32>
    %14 = tpu.matmul %12, %13, %cst_13 {dimension_numbers = #tpu.dot_dimension_numbers<[1], [0], [0], [1], [0, 0, 1, 1], [], []>} : vector<128x128xbf16>, vector<128x128xbf16>, vector<128x128xf32> -> vector<128x128xf32>
    %c0_14 = arith.constant 0 : index
    %c0_15 = arith.constant 0 : index
    %15 = vector.load %arg7[%c0_14, %c0_15] : memref<1x128xf32, #tpu.memory_space<vmem>>, vector<1x128xf32>
    %16 = vector.broadcast %15 : vector<1x128xf32> to vector<128x128xf32>
    %17 = arith.addf %14, %16 : vector<128x128xf32>
    %cst_16 = arith.constant 0.000000e+00 : f32
    %18 = vector.broadcast %cst_16 : f32 to vector<128x128xf32>
    %19 = arith.maximumf %17, %18 : vector<128x128xf32>
    %20 = tpu.transpose %19, [1, 0] : vector<128x128xf32> -> vector<128x128xf32>
    %c0_17 = arith.constant 0 : index
    %c0_18 = arith.constant 0 : index
    %21 = vector.load %arg8[%c0_17, %c0_18] : memref<1x128xf32, #tpu.memory_space<vmem>>, vector<1x128xf32>
    %cst_19 = arith.constant dense<0.000000e+00> : vector<1x128xf32>
    %22 = tpu.matmul %21, %20, %cst_19 {dimension_numbers = #tpu.dot_dimension_numbers<[1], [0], [0], [1], [0, 0, 1, 1], [], []>} : vector<1x128xf32>, vector<128x128xf32>, vector<1x128xf32> -> vector<1x128xf32>
    %c0_20 = arith.constant 0 : index
    %c0_21 = arith.constant 0 : index
    %23 = vector.load %arg9[%c0_20, %c0_21] : memref<1x1xf32, #tpu.memory_space<vmem>>, vector<1x1xf32>
    %24 = vector.broadcast %23 : vector<1x1xf32> to vector<1x128xf32>
    %25 = arith.addf %22, %24 : vector<1x128xf32>
    %26 = arith.negf %25 : vector<1x128xf32>
    %27 = math.exp %26 : vector<1x128xf32>
    %cst_22 = arith.constant 1.000000e+00 : f32
    %28 = vector.broadcast %cst_22 : f32 to vector<1x128xf32>
    %29 = arith.addf %28, %27 : vector<1x128xf32>
    %30 = arith.divf %28, %29 : vector<1x128xf32>
    %c0_23 = arith.constant 0 : index
    %c0_24 = arith.constant 0 : index
    %31 = vector.load %arg10[%c0_23, %c0_24] : memref<1x128xf32, #tpu.memory_space<vmem>>, vector<1x128xf32>
    tpu.vector_store %arg10[%c0_23, %c0_24], %30 {strides = array<i32>} : memref<1x128xf32, #tpu.memory_space<vmem>>, vector<1x128xf32>,
    return
  }
  func.func @transform_0(%arg0: i32) -> (i32, i32) {
    %c0_i32 = arith.constant 0 : i32
    %c0_i32_0 = arith.constant 0 : i32
    return %arg0, %c0_i32 : i32, i32
  }
  func.func @transform_1(%arg0: i32) -> (i32, i32) {
    %c0_i32 = arith.constant 0 : i32
    %c0_i32_0 = arith.constant 0 : i32
    return %arg0, %c0_i32 : i32, i32
  }
  func.func @transform_2(%arg0: i32) -> (i32, i32) {
    %c0_i32 = arith.constant 0 : i32
    %c0_i32_0 = arith.constant 0 : i32
    %c0_i32_1 = arith.constant 0 : i32
    return %c0_i32, %c0_i32_0 : i32, i32
  }
  func.func @transform_3(%arg0: i32) -> (i32, i32) {
    %c0_i32 = arith.constant 0 : i32
    %c0_i32_0 = arith.constant 0 : i32
    %c0_i32_1 = arith.constant 0 : i32
    return %c0_i32, %c0_i32_0 : i32, i32
  }
  func.func @transform_4(%arg0: i32) -> (i32, i32) {
    %c0_i32 = arith.constant 0 : i32
    %c0_i32_0 = arith.constant 0 : i32
    %c0_i32_1 = arith.constant 0 : i32
    return %c0_i32, %c0_i32_0 : i32, i32
  }
  func.func @transform_5(%arg0: i32) -> (i32, i32) {
    %c0_i32 = arith.constant 0 : i32
    %c0_i32_0 = arith.constant 0 : i32
    %c0_i32_1 = arith.constant 0 : i32
    return %c0_i32, %c0_i32_0 : i32, i32
  }
  func.func @transform_6(%arg0: i32) -> (i32, i32) {
    %c0_i32 = arith.constant 0 : i32
    %c0_i32_0 = arith.constant 0 : i32
    %c0_i32_1 = arith.constant 0 : i32
    return %c0_i32, %c0_i32_0 : i32, i32
  }
  func.func @transform_7(%arg0: i32) -> (i32, i32) {
    %c0_i32 = arith.constant 0 : i32
    %c0_i32_0 = arith.constant 0 : i32
    %c0_i32_1 = arith.constant 0 : i32
    return %c0_i32, %c0_i32_0 : i32, i32
  }
  func.func @transform_8(%arg0: i32) -> (i32, i32) {
    %c0_i32 = arith.constant 0 : i32
    %c0_i32_0 = arith.constant 0 : i32
    %c0_i32_1 = arith.constant 0 : i32
    return %c0_i32, %c0_i32_0 : i32, i32
  }
  func.func @transform_9(%arg0: i32) -> (i32, i32) {
    %c0_i32 = arith.constant 0 : i32
    %c0_i32_0 = arith.constant 0 : i32
    return %c0_i32, %arg0 : i32, i32
  }
}

</mosaic_0001>

<bundles_post_ra>
// kernel: tpu_custom_call.1
= control target key start
LH: loop header
LB: loop body
LE: loop exit
PB: predicated region body
PF: predicated region fallthrough
CT: control target
= control target key end

     0   :  { %s1549_s0 = inlined_call_operand.hbm [shape: bf16[128,128], index: 0, kind: input, shape index: {}]   ;;  %s1550_s1 = inlined_call_operand.hbm [shape: bf16[128,128], index: 1, kind: input, shape index: {}]   ;;  %s1551_s2 = inlined_call_operand.hbm [shape: bf16[128,128], index: 2, kind: input, shape index: {}]   ;;  %s1552_s3 = inlined_call_operand.hbm [shape: bf16[128,128], index: 3, kind: input, shape index: {}]   ;;  %s1553_s4 = inlined_call_operand.vmem [shape: f32[1,128], index: 4, kind: input, shape index: {}]   ;;  %s1554_s5 = inlined_call_operand.hbm [shape: bf16[128,128], index: 5, kind: input, shape index: {}]   ;;  %s1555_s6 = inlined_call_operand.vmem [shape: f32[1,128], index: 6, kind: input, shape index: {}]   ;;  %s1556_s7 = inlined_call_operand.vmem [shape: f32[1,128], index: 7, kind: input, shape index: {}]   ;;  %s1557_s8 = inlined_call_operand.<no memory space> [shape: f32[1,1], index: 8, kind: input, shape index: {}]   ;;  %s1558_s9 = inlined_call_operand.hbm [shape: f32[1,128], index: 9, kind: output, shape index: {}]  }
   0x1   :  { %v14_v0 = vstv %s1557_s8 }
   0x2   :  { %15 = vst [vmem:[#allocation2] sm:$0x1] %v14_v0 }
   0x3   :  { %16 = vsyncpa [#allocation4], 0 }
   0x4   :  { %17 = vsyncpa [#allocation7], 0 }
   0x5   :  { %18 = vsyncpa [#allocation10], 0 }
   0x6   :  { %19 = vsyncpa [#allocation5], 0  ;;  %s1366_s11 = smov [#allocation6]   ;;  %s1367_s13 = smov [#allocation9]  }
   0x7   :  { %s37_s12 = sshll.u32 %s1366_s11, 4  ;;  %s61_s14 = sshll.u32 %s1367_s13, 4  ;;  %s38_s12 = int_to_ptr.vmem [resolvable:$true] %s37_s12  ;;  %s1431_s14 = int_to_ptr.vmem [resolvable:$true] %s61_s14 }
   0x8   :  { %s1226_s17 = scalar_lea.hbm %s1550_s1, 1024 }
   0x9   :  { %p1227_p0 = scmp.ne.s32.totalorder %s1550_s1, %s1226_s17  ;;  %p1230_p1 = scmp.lt.u32.totalorder %s1226_s17, %s1550_s1 }
   0xb   :  { %p1232_p2 = pnand %p1230_p1, %p1227_p0 }
   0xd   :  { %1235 = shalt.err (!%p1232_p2)
}
   0xe   :  { %s1236_s21 = scalar_lea.vmem %s38_s12, 1024  ;;  %p1241_p4 = scmp.lt.s32.totalorder %s38_s12, %s38_s12 }
   0xf   :  { %p1237_p3 = scmp.ne.s32.totalorder %s38_s12, %s1236_s21  ;;  %p1242_p5 = scmp.lt.s32.totalorder %s1236_s21, %s1236_s21 }
  0x11   :  { %p1243_p6 = por %p1242_p5, %p1241_p4 }
  0x13   :  { %p1244_p7 = pnand %p1243_p6, %p1237_p3 }
  0x15   :  { %1247 = shalt.err (!%p1244_p7)
}
  0x16   :  { %s1368_s22 = smov 64   ;;  %s1369_s23 = smov 4  }
  0x17   :  { %43 = dma.hbm_to_vmem [thread:$0]  %s1550_s1, 1024, %s38_s12, [#allocation7], %s1368_s22, %s1368_s22, %s1369_s23  }
  0x18   :  { %s1248_s28 = scalar_lea.hbm %s1552_s3, 1024 }
  0x19   :  { %p1249_p8 = scmp.ne.s32.totalorder %s1552_s3, %s1248_s28  ;;  %p1252_p9 = scmp.lt.u32.totalorder %s1248_s28, %s1552_s3 }
  0x1b   :  { %p1254_p10 = pnand %p1252_p9, %p1249_p8 }
  0x1d   :  { %1257 = shalt.err (!%p1254_p10)
}
  0x1e   :  { %s1258_s13 = scalar_lea.vmem %s1431_s14, 1024  ;;  %p1263_p12 = scmp.lt.s32.totalorder %s1431_s14, %s1431_s14 }
  0x1f   :  { %p1259_p11 = scmp.ne.s32.totalorder %s1431_s14, %s1258_s13  ;;  %p1264_p13 = scmp.lt.s32.totalorder %s1258_s13, %s1258_s13 }
  0x21   :  { %p1265_p0 = por %p1264_p13, %p1263_p12 }
  0x23   :  { %p1266_p1 = pnand %p1265_p0, %p1259_p11 }
  0x25   :  { %1269 = shalt.err (!%p1266_p1)
}
  0x26   :  { %67 = dma.hbm_to_vmem [thread:$0]  %s1552_s3, 1024, %s1431_s14, [#allocation10], %s1368_s22, %s1368_s22, %s1369_s23  }
  0x27   :  { %s1370_s15 = smov [#allocation3]   ;;  %s1371_s17 = smov [#allocation8]  }
  0x28   :  { %s25_s16 = sshll.u32 %s1370_s15, 4  ;;  %s49_s18 = sshll.u32 %s1371_s17, 4  ;;  %s26_s16 = int_to_ptr.vmem [resolvable:$true] %s25_s16  ;;  %s1468_s18 = int_to_ptr.vmem [resolvable:$true] %s49_s18 }
  0x29   :  { %s1270_s20 = scalar_lea.hbm %s1549_s0, 1024 }
  0x2a   :  { %p1271_p2 = scmp.ne.s32.totalorder %s1549_s0, %s1270_s20  ;;  %p1274_p3 = scmp.lt.u32.totalorder %s1270_s20, %s1549_s0 }
  0x2c   :  { %p1276_p4 = pnand %p1274_p3, %p1271_p2 }
  0x2e   :  { %1279 = shalt.err (!%p1276_p4)
}
  0x2f   :  { %s1280_s3 = scalar_lea.vmem %s26_s16, 1024  ;;  %p1285_p6 = scmp.lt.s32.totalorder %s26_s16, %s26_s16 }
  0x30   :  { %p1281_p5 = scmp.ne.s32.totalorder %s26_s16, %s1280_s3  ;;  %p1286_p7 = scmp.lt.s32.totalorder %s1280_s3, %s1280_s3 }
  0x32   :  { %p1287_p8 = por %p1286_p7, %p1285_p6 }
  0x34   :  { %p1288_p9 = pnand %p1287_p8, %p1281_p5 }
  0x36   :  { %1291 = shalt.err (!%p1288_p9)
}
  0x37   :  { %31 = dma.hbm_to_vmem [thread:$0]  %s1549_s0, 1024, %s26_s16, [#allocation4], %s1368_s22, %s1368_s22, %s1369_s23  }
  0x38   :  { %s1292_s30 = scalar_lea.hbm %s1551_s2, 1024 }
  0x39   :  { %p1293_p10 = scmp.ne.s32.totalorder %s1551_s2, %s1292_s30  ;;  %p1296_p11 = scmp.lt.u32.totalorder %s1292_s30, %s1551_s2 }
  0x3b   :  { %p1298_p12 = pnand %p1296_p11, %p1293_p10 }
  0x3d   :  { %1301 = shalt.err (!%p1298_p12)
}
  0x3e   :  { %s1302_s12 = scalar_lea.vmem %s1468_s18, 1024  ;;  %p1307_p0 = scmp.lt.s32.totalorder %s1468_s18, %s1468_s18 }
  0x3f   :  { %p1303_p13 = scmp.ne.s32.totalorder %s1468_s18, %s1302_s12  ;;  %p1308_p1 = scmp.lt.s32.totalorder %s1302_s12, %s1302_s12 }
  0x41   :  { %p1309_p2 = por %p1308_p1, %p1307_p0 }
  0x43   :  { %p1310_p3 = pnand %p1309_p2, %p1303_p13 }
  0x45   :  { %1313 = shalt.err (!%p1310_p3)
}
  0x46   :  { %55 = dma.hbm_to_vmem [thread:$0]  %s1551_s2, 1024, %s1468_s18, [#allocation7], %s1368_s22, %s1368_s22, %s1369_s23  }
  0x47   :  { %s1372_s16 = smov [#allocation11]   ;;  %s1314_s20 = scalar_lea.hbm %s1554_s5, 1024 }
  0x48   :  { %s75_s17 = sshll.u32 %s1372_s16, 4  ;;  %p1315_p4 = scmp.ne.s32.totalorder %s1554_s5, %s1314_s20  ;;  %s76_s17 = int_to_ptr.vmem [resolvable:$true] %s75_s17 }
  0x49   :  { %p1318_p5 = scmp.lt.u32.totalorder %s1314_s20, %s1554_s5 }
  0x4b   :  { %p1320_p6 = pnand %p1318_p5, %p1315_p4 }
  0x4d   :  { %1323 = shalt.err (!%p1320_p6)
}
  0x4e   :  { %s1324_s3 = scalar_lea.vmem %s76_s17, 1024  ;;  %p1329_p8 = scmp.lt.s32.totalorder %s76_s17, %s76_s17 }
  0x4f   :  { %p1325_p7 = scmp.ne.s32.totalorder %s76_s17, %s1324_s3  ;;  %p1330_p9 = scmp.lt.s32.totalorder %s1324_s3, %s1324_s3 }
  0x51   :  { %p1331_p10 = por %p1330_p9, %p1329_p8 }
  0x53   :  { %p1332_p11 = pnand %p1331_p10, %p1325_p7 }
  0x55   :  { %1335 = shalt.err (!%p1332_p11)
}
  0x56   :  { %81 = dma.hbm_to_vmem [thread:$0]  %s1554_s5, 1024, %s76_s17, [#allocation10], %s1368_s22, %s1368_s22, %s1369_s23  }
  0x57   :  { %1358 = dma.done.wait [#allocation4], 1024  }
  0x58   :  { %1359 = vsyncadd [#allocation4], 4294966272 }
  0x59   :  { %1360 = dma.done.wait [#allocation7], 2048  }
  0x5a   :  { %1361 = vsyncadd [#allocation7], 4294965248 }
  0x5b   :  { %1362 = dma.done.wait [#allocation10], 2048  }
  0x5c   :  { %1363 = vsyncadd [#allocation10], 4294965248  ;;  %v1182_v1 = vld [vmem:[#allocation9] sm:$0xff]   ;;  %v1183_v2 = vld [vmem:[#allocation9 + $0x8] sm:$0xff]   ;;  %vm1374_vm0 = vmmov 0   ;;  %s1377_s27 = smov [#allocation12]  }
  0x5d   :  { %998 = vmatprep.subr.bf16.mxu0 %v1182_v1  ;;  %v1184_v3 = vld [vmem:[#allocation9 + $0x10] sm:$0xff]   ;;  %v1185_v4 = vld [vmem:[#allocation9 + $0x18] sm:$0xff]   ;;  %v1190_v5 = vld [vmem:[#allocation6] sm:$0xff]   ;;  %s879_s28 = sshll.u32 %s1377_s27, 4  ;;  %s880_s28 = int_to_ptr.vmem [resolvable:$true] %s879_s28 }
  0x5e   :  { %999 = vmatpush3.bf16.msra.mxu0 %v1182_v1  ;;  %1014 = vmatprep.mubr.bf16.mxu0 %v1190_v5  ;;  %v1186_v6 = vld [vmem:[#allocation9 + $0x20] sm:$0xff]   ;;  %v1187_v7 = vld [vmem:[#allocation9 + $0x28] sm:$0xff]   ;;  %v1188_v8 = vld [vmem:[#allocation9 + $0x30] sm:$0xff]   ;;  %s1340_s29 = scalar_lea.vmem %s880_s28, 32  ;;  %p1341_p13 = scmp.lt.s32.totalorder %s880_s28, %s880_s28 }
  0x5f   :  { %1000 = vmatprep.subr.bf16.mxu0 %v1183_v2  ;;  %v1189_v9 = vld [vmem:[#allocation9 + $0x38] sm:$0xff]   ;;  %v1192_v10 = vld [vmem:[#allocation8] sm:$0xff]   ;;  %v1191_v11 = vld [vmem:[#allocation6 + $0x8] sm:$0xff]  }
  0x60   :  { %v1193_v12 = vld [vmem:[#allocation8 + $0x8] sm:$0xff]   ;;  %v1194_v13 = vld [vmem:[#allocation6 + $0x10] sm:$0xff]   ;;  %v1214_v14 = vld [vmem:[#allocation11] sm:$0xff]  }
  0x61   :  { %v1215_v15 = vld [vmem:[#allocation11 + $0x8] sm:$0xff]   ;;  %1062 = vmatprep.subr.bf16.mxu1 %v1214_v14  ;;  %v1195_v16 = vld [vmem:[#allocation6 + $0x18] sm:$0xff]   ;;  %v1196_v17 = vld [vmem:[#allocation8 + $0x10] sm:$0xff]  }
  0x62   :  { %1001 = vmatpush3.bf16.msra.mxu0 %v1183_v2  ;;  %1063 = vmatpush3.bf16.msra.mxu1 %v1214_v14  ;;  %v1216_v18 = vld [vmem:[#allocation11 + $0x10] sm:$0xff]   ;;  %v1198_v19 = vld [vmem:[#allocation6 + $0x20] sm:$0xff]   ;;  %v1197_v20 = vld [vmem:[#allocation8 + $0x18] sm:$0xff]  }
  0x63   :  { %1002 = vmatprep.subr.bf16.mxu0 %v1184_v3  ;;  %1064 = vmatprep.subr.bf16.mxu1 %v1215_v15  ;;  %v1217_v21 = vld [vmem:[#allocation11 + $0x18] sm:$0xff]   ;;  %v1200_v22 = vld [vmem:[#allocation8 + $0x20] sm:$0xff]   ;;  %v1199_v24 = vld [vmem:[#allocation6 + $0x28] sm:$0xff]  }
  0x64   :  { %v1218_v23 = vld [vmem:[#allocation11 + $0x20] sm:$0xff]   ;;  %v1202_v25 = vld [vmem:[#allocation6 + $0x30] sm:$0xff]   ;;  %v1201_v26 = vld [vmem:[#allocation8 + $0x28] sm:$0xff]  }
  0x65   :  { %v1219_v27 = vld [vmem:[#allocation11 + $0x28] sm:$0xff]   ;;  %v1204_v28 = vld [vmem:[#allocation8 + $0x30] sm:$0xff]   ;;  %v1203_v29 = vld [vmem:[#allocation6 + $0x38] sm:$0xff]  }
  0x66   :  { %1003 = vmatpush3.bf16.msra.mxu0 %v1184_v3  ;;  %1065 = vmatpush3.bf16.msra.mxu1 %v1215_v15  ;;  %v1206_v30 = vld [vmem:[#allocation3] sm:$0xff]   ;;  %v1205_v31 = vld [vmem:[#allocation8 + $0x38] sm:$0xff]   ;;  %v1207_v32 = vld [vmem:[#allocation3 + $0x8] sm:$0xff]  }
  0x67   :  { %1004 = vmatprep.subr.bf16.mxu0 %v1185_v4  ;;  %1066 = vmatprep.subr.bf16.mxu1 %v1216_v18  ;;  %v1208_v33 = vld [vmem:[#allocation3 + $0x10] sm:$0xff]   ;;  %v1209_v34 = vld [vmem:[#allocation3 + $0x18] sm:$0xff]   ;;  %v1210_v35 = vld [vmem:[#allocation3 + $0x20] sm:$0xff]  }
  0x68   :  { %v1211_v36 = vld [vmem:[#allocation3 + $0x28] sm:$0xff]   ;;  %v1212_v37 = vld [vmem:[#allocation3 + $0x30] sm:$0xff]   ;;  %v1213_v38 = vld [vmem:[#allocation3 + $0x38] sm:$0xff]  }
  0x69   :  { %v1220_v39 = vld [vmem:[#allocation11 + $0x30] sm:$0xff]   ;;  %v1221_v40 = vld [vmem:[#allocation11 + $0x38] sm:$0xff]  }
  0x6a   :  { %1005 = vmatpush3.bf16.msra.mxu0 %v1185_v4  ;;  %1067 = vmatpush3.bf16.msra.mxu1 %v1216_v18  ;;  %v922_v41 = vld [vmem:[%s1553_s4] ss:$0 sm:$0xff] }
  0x6b   :  { %1006 = vmatprep.subr.bf16.mxu0 %v1186_v6  ;;  %1068 = vmatprep.subr.bf16.mxu1 %v1217_v21 }
  0x6e   :  { %1007 = vmatpush3.bf16.msra.mxu0 %v1186_v6  ;;  %1069 = vmatpush3.bf16.msra.mxu1 %v1217_v21 }
  0x6f   :  { %1008 = vmatprep.subr.bf16.mxu0 %v1187_v7  ;;  %1070 = vmatprep.subr.bf16.mxu1 %v1218_v23 }
  0x72   :  { %1009 = vmatpush3.bf16.msra.mxu0 %v1187_v7  ;;  %1071 = vmatpush3.bf16.msra.mxu1 %v1218_v23 }
  0x73   :  { %1010 = vmatprep.subr.bf16.mxu0 %v1188_v8  ;;  %1072 = vmatprep.subr.bf16.mxu1 %v1219_v27 }
  0x76   :  { %1011 = vmatpush3.bf16.msra.mxu0 %v1188_v8  ;;  %1073 = vmatpush3.bf16.msra.mxu1 %v1219_v27 }
  0x77   :  { %1012 = vmatprep.subr.bf16.mxu0 %v1189_v9  ;;  %1074 = vmatprep.subr.bf16.mxu1 %v1220_v39 }
  0x7a   :  { %1013 = vmatpush3.bf16.msra.mxu0 %v1189_v9  ;;  %1075 = vmatpush3.bf16.msra.mxu1 %v1220_v39 }
  0x7b   :  { %1030 = vmatprep.subr.bf16.mxu0 %v1192_v10  ;;  %1076 = vmatprep.subr.bf16.mxu1 %v1221_v40 }
  0x7d   :  { %1015 = vmatmul.mubr.bf16.vlgmr.msra.gmra.mrb[0].mxu0 %v1191_v11 }
  0x7e   :  { %1031 = vmatpush3.bf16.msra.mxu0 %v1192_v10  ;;  %1018 = vmatprep.mubr.bf16.mxu0 %v1194_v13 }
  0x7f   :  { %1032 = vmatprep.subr.bf16.mxu0 %v1193_v12  ;;  %1077 = vmatpush3.bf16.msra.mxu1 %v1221_v40 }
  0x82   :  { %1033 = vmatpush3.bf16.msra.mxu0 %v1193_v12 }
  0x83   :  { %1034 = vmatprep.subr.bf16.mxu0 %v1196_v17 }
  0x85   :  { %1019 = vmatmul.mubr.bf16.gmra.mrb[4].mxu0 %v1195_v16 }
  0x86   :  { %1035 = vmatpush3.bf16.msra.mxu0 %v1196_v17  ;;  %1022 = vmatprep.mubr.bf16.mxu0 %v1198_v19 }
  0x87   :  { %1036 = vmatprep.subr.bf16.mxu0 %v1197_v20 }
  0x8a   :  { %1037 = vmatpush3.bf16.msra.mxu0 %v1197_v20 }
  0x8b   :  { %1038 = vmatprep.subr.bf16.mxu0 %v1200_v22 }
  0x8d   :  { %1023 = vmatmul.mubr.bf16.gmra.mrb[8].mxu0 %v1199_v24 }
  0x8e   :  { %1039 = vmatpush3.bf16.msra.mxu0 %v1200_v22  ;;  %1026 = vmatprep.mubr.bf16.mxu0 %v1202_v25 }
  0x8f   :  { %1040 = vmatprep.subr.bf16.mxu0 %v1201_v26 }
  0x92   :  { %1041 = vmatpush3.bf16.msra.mxu0 %v1201_v26 }
  0x93   :  { %1042 = vmatprep.subr.bf16.mxu0 %v1204_v28 }
  0x95   :  { %1027 = vmatmul.mubr.bf16.gmra.mrb[12].mxu0 %v1203_v29 }
  0x96   :  { %1043 = vmatpush3.bf16.msra.mxu0 %v1204_v28  ;;  %1046 = vmatprep.mubr.bf16.mxu0 %v1206_v30 }
  0x97   :  { %1044 = vmatprep.subr.bf16.mxu0 %v1205_v31 }
  0x9a   :  { %1045 = vmatpush3.bf16.msra.mxu0 %v1205_v31 }
  0x9d   :  { %1047 = vmatmul.mubr.bf16.vlgmr.msra.gmra.mrb[0].mxu0 %v1207_v32 }
  0x9e   :  { %1050 = vmatprep.mubr.bf16.mxu0 %v1208_v33 }
  0xa5   :  { %1051 = vmatmul.mubr.bf16.gmra.mrb[4].mxu0 %v1209_v34  ;;  %v1373_v34 = vmov 0.0|0.0  }
  0xa6   :  { %1054 = vmatprep.mubr.bf16.mxu0 %v1210_v35  ;;  %1129 = vmatprep.subr.bf16.mxu1 %v1373_v34  ;;  %v1375_v35 = vmov 0.0  }
  0xad   :  { %1055 = vmatmul.mubr.bf16.gmra.mrb[8].mxu0 %v1211_v36  ;;  %v786_v36 = vld [vmem:[#allocation2] sm:$0x1] }
  0xae   :  { %1058 = vmatprep.mubr.bf16.mxu0 %v1212_v37  ;;  %v1376_v37 = vmov 0  }
  0xaf   :  { %1181 = vset.pattern.permute.xlu0 %v1376_v37 }
  0xb0   :  { %789 = vperm.xlu0 %1181, %v786_v36  }
  0xb5   :  { %1059 = vmatmul.mubr.bf16.gmra.mrb[12].mxu0 %v1213_v38  ;;  %v923_v38 = vld [vmem:[%s1555_s6] ss:$0 sm:$0xff] }
 0x12f   :  { %v790_v36 = vpop.permute.xlu0 %789 }
 0x170   :  { %v1048_v42 = vpop.f32.mrb[0].mxu0 }
 0x171   :  { %v563_v43 = vadd.f32 %v1048_v42, %v922_v41  ;;  %v491_v44 = vpop.f32.mrb[1].mxu0 }
 0x172   :  { %v561_v45 = vadd.f32 %v922_v41, %v491_v44  ;;  %v1049_v46 = vpop.f32.mrb[2].mxu0 }
 0x173   :  { %v564_v47 = vadd.f32 %v1049_v46, %v922_v41  ;;  %v494_v48 = vpop.f32.mrb[3].mxu0  ;;  %v579_v50 = vmax.f32 %v563_v43, 0.0 }
 0x174   :  { %v562_v49 = vadd.f32 %v922_v41, %v494_v48  ;;  %v577_v52 = vmax.f32 %v561_v45, 0.0 }
 0x175   :  { %v580_v51 = vmax.f32 %v564_v47, 0.0 }
 0x176   :  { %v578_v53 = vmax.f32 %v562_v49, 0.0 }
 0x177   :  { %v594_v54 = vpack.c.bf16 %v580_v51, %v579_v50 }
 0x178   :  { %v1052_v55 = vpop.f32.mrb[4].mxu0  ;;  %v593_v56 = vpack.c.bf16 %v578_v53, %v577_v52 }
 0x179   :  { %v567_v57 = vadd.f32 %v1052_v55, %v922_v41  ;;  %v507_v58 = vpop.f32.mrb[5].mxu0 }
 0x17a   :  { %v565_v59 = vadd.f32 %v922_v41, %v507_v58  ;;  %v1053_v60 = vpop.f32.mrb[6].mxu0  ;;  %1078 = vmatprep.mubr.bf16.mxu1 %v593_v56 }
 0x17b   :  { %v568_v61 = vadd.f32 %v1053_v60, %v922_v41  ;;  %v510_v62 = vpop.f32.mrb[7].mxu0  ;;  %1079 = vmatmul.mubr.bf16.vlgmr.msra.gmra.mrb[0].mxu1 %v594_v54  ;;  %v583_v0 = vmax.f32 %v567_v57, 0.0 }
 0x17c   :  { %v566_v63 = vadd.f32 %v922_v41, %v510_v62  ;;  %v581_v2 = vmax.f32 %v565_v59, 0.0 }
 0x17d   :  { %v584_v1 = vmax.f32 %v568_v61, 0.0 }
 0x17e   :  { %v582_v3 = vmax.f32 %v566_v63, 0.0 }
 0x17f   :  { %v596_v4 = vpack.c.bf16 %v584_v1, %v583_v0 }
 0x180   :  { %v595_v5 = vpack.c.bf16 %v582_v3, %v581_v2  ;;  %v1056_v6 = vpop.f32.mrb[8].mxu0 }
 0x181   :  { %v571_v7 = vadd.f32 %v1056_v6, %v922_v41  ;;  %v523_v8 = vpop.f32.mrb[9].mxu0 }
 0x182   :  { %v569_v9 = vadd.f32 %v922_v41, %v523_v8  ;;  %v1057_v10 = vpop.f32.mrb[10].mxu0  ;;  %1082 = vmatprep.mubr.bf16.mxu1 %v595_v5 }
 0x183   :  { %v572_v11 = vadd.f32 %v1057_v10, %v922_v41  ;;  %v526_v12 = vpop.f32.mrb[11].mxu0  ;;  %1083 = vmatmul.mubr.bf16.gmra.mrb[4].mxu1 %v596_v4  ;;  %v587_v14 = vmax.f32 %v571_v7, 0.0 }
 0x184   :  { %v570_v13 = vadd.f32 %v922_v41, %v526_v12  ;;  %v585_v16 = vmax.f32 %v569_v9, 0.0 }
 0x185   :  { %v588_v15 = vmax.f32 %v572_v11, 0.0 }
 0x186   :  { %v586_v17 = vmax.f32 %v570_v13, 0.0 }
 0x187   :  { %v598_v18 = vpack.c.bf16 %v588_v15, %v587_v14 }
 0x188   :  { %v597_v19 = vpack.c.bf16 %v586_v17, %v585_v16  ;;  %v1060_v20 = vpop.f32.mrb[12].mxu0 }
 0x189   :  { %v575_v21 = vadd.f32 %v1060_v20, %v922_v41  ;;  %v539_v22 = vpop.f32.mrb[13].mxu0 }
 0x18a   :  { %v573_v23 = vadd.f32 %v922_v41, %v539_v22  ;;  %v1061_v24 = vpop.f32.mrb[14].mxu0  ;;  %1086 = vmatprep.mubr.bf16.mxu1 %v597_v19 }
 0x18b   :  { %v576_v25 = vadd.f32 %v1061_v24, %v922_v41  ;;  %v542_v26 = vpop.f32.mrb[15].mxu0  ;;  %1087 = vmatmul.mubr.bf16.gmra.mrb[8].mxu1 %v598_v18  ;;  %v591_v28 = vmax.f32 %v575_v21, 0.0 }
 0x18c   :  { %v574_v27 = vadd.f32 %v922_v41, %v542_v26  ;;  %v589_v30 = vmax.f32 %v573_v23, 0.0 }
 0x18d   :  { %v592_v29 = vmax.f32 %v576_v25, 0.0 }
 0x18e   :  { %v590_v31 = vmax.f32 %v574_v27, 0.0 }
 0x18f   :  { %v600_v32 = vpack.c.bf16 %v592_v29, %v591_v28 }
 0x190   :  { %v599_v33 = vpack.c.bf16 %v590_v31, %v589_v30  ;;  %v785_v31 = vld [vmem:[%s1556_s7] sm:$0x1]  ;;  %s1336_s7 = scalar_lea.vmem %s880_s28, 16 }
 0x191   :  { %p1337_p12 = scmp.ne.s32.totalorder %s880_s28, %s1336_s7  ;;  %p1342_p0 = scmp.lt.s32.totalorder %s1340_s29, %s1336_s7 }
 0x192   :  { %1090 = vmatprep.mubr.bf16.mxu1 %v599_v33 }
 0x193   :  { %1091 = vmatmul.mubr.bf16.gmra.mrb[12].mxu1 %v600_v32  ;;  %v792_v32 = vlaneseq  ;;  %p1343_p1 = por %p1342_p0, %p1341_p13 }
 0x194   :  { %1126 = vmatprep.mubr.msk.f32.mxu1 %vm1374_vm0, %v1375_v35 }
 0x195   :  { %v793_v33 = vshrl.u32 %v792_v32, 7  ;;  %p1344_p2 = pnand %p1343_p1, %p1337_p12 }
 0x197   :  { %v794_v35 = vsub.s32 0, %v793_v33 }
 0x199   :  { %v795_v37 = vrot.slane %v790_v36, %v794_v35 }
 0x24e   :  { %v1080_v39 = vpop.f32.mrb[0].mxu1 }
 0x24f   :  { %v715_v40 = vadd.f32 %v1080_v39, %v923_v38  ;;  %v706_v41 = vpop.f32.mrb[1].mxu1 }
 0x250   :  { %v707_v42 = vadd.f32 %v923_v38, %v706_v41  ;;  %v1081_v43 = vpop.f32.mrb[2].mxu1 }
 0x251   :  { %v718_v44 = vadd.f32 %v1081_v43, %v923_v38  ;;  %v709_v45 = vpop.f32.mrb[3].mxu1  ;;  %v771_v47 = vmax.f32 %v715_v40, 0.0 }
 0x252   :  { %v710_v46 = vadd.f32 %v923_v38, %v709_v45  ;;  %v769_v49 = vmax.f32 %v707_v42, 0.0 }
 0x253   :  { %v772_v48 = vmax.f32 %v718_v44, 0.0 }
 0x254   :  { %v770_v50 = vmax.f32 %v710_v46, 0.0 }
 0x255   :  { %v1133_v51 = vpack.c.bf16 %v772_v48, %v771_v47 }
 0x256   :  { %v1130_v52 = vpack.c.bf16 %v770_v50, %v769_v49  ;;  %v1084_v53 = vpop.f32.mrb[4].mxu1 }
 0x257   :  { %v731_v54 = vadd.f32 %v1084_v53, %v923_v38  ;;  %v722_v55 = vpop.f32.mrb[5].mxu1 }
 0x258   :  { %v723_v56 = vadd.f32 %v923_v38, %v722_v55  ;;  %v1085_v57 = vpop.f32.mrb[6].mxu1  ;;  %1131 = vmatpush3.bf16.xpose.msra.mxu1 %v1130_v52 }
 0x259   :  { %v734_v58 = vadd.f32 %v1085_v57, %v923_v38  ;;  %v725_v59 = vpop.f32.mrb[7].mxu1  ;;  %1132 = vmatprep.subr.bf16.mxu1 %v1373_v34  ;;  %v775_v61 = vmax.f32 %v731_v54, 0.0 }
 0x25a   :  { %v726_v60 = vadd.f32 %v923_v38, %v725_v59  ;;  %v773_v63 = vmax.f32 %v723_v56, 0.0 }
 0x25b   :  { %v776_v62 = vmax.f32 %v734_v58, 0.0 }
 0x25c   :  { %v774_v0 = vmax.f32 %v726_v60, 0.0 }
 0x25d   :  { %v1139_v1 = vpack.c.bf16 %v776_v62, %v775_v61 }
 0x25e   :  { %v1136_v2 = vpack.c.bf16 %v774_v0, %v773_v63  ;;  %v1088_v3 = vpop.f32.mrb[8].mxu1 }
 0x25f   :  { %v747_v4 = vadd.f32 %v1088_v3, %v923_v38  ;;  %v738_v5 = vpop.f32.mrb[9].mxu1 }
 0x260   :  { %v739_v6 = vadd.f32 %v923_v38, %v738_v5  ;;  %v1089_v7 = vpop.f32.mrb[10].mxu1  ;;  %1134 = vmatpush3.bf16.xpose.msra.mxu1 %v1133_v51 }
 0x261   :  { %v750_v8 = vadd.f32 %v1089_v7, %v923_v38  ;;  %v741_v9 = vpop.f32.mrb[11].mxu1  ;;  %1135 = vmatprep.subr.bf16.mxu1 %v1373_v34  ;;  %v779_v11 = vmax.f32 %v747_v4, 0.0 }
 0x262   :  { %v742_v10 = vadd.f32 %v923_v38, %v741_v9  ;;  %v777_v13 = vmax.f32 %v739_v6, 0.0 }
 0x263   :  { %v780_v12 = vmax.f32 %v750_v8, 0.0 }
 0x264   :  { %v778_v14 = vmax.f32 %v742_v10, 0.0 }
 0x265   :  { %v1145_v15 = vpack.c.bf16 %v780_v12, %v779_v11 }
 0x266   :  { %v1142_v16 = vpack.c.bf16 %v778_v14, %v777_v13  ;;  %v1092_v17 = vpop.f32.mrb[12].mxu1 }
 0x267   :  { %v763_v18 = vadd.f32 %v1092_v17, %v923_v38  ;;  %v754_v19 = vpop.f32.mrb[13].mxu1 }
 0x268   :  { %v755_v20 = vadd.f32 %v923_v38, %v754_v19  ;;  %v1093_v21 = vpop.f32.mrb[14].mxu1  ;;  %1137 = vmatpush3.bf16.xpose.msra.mxu1 %v1136_v2 }
 0x269   :  { %v766_v22 = vadd.f32 %v1093_v21, %v923_v38  ;;  %v757_v23 = vpop.f32.mrb[15].mxu1  ;;  %1138 = vmatprep.subr.bf16.mxu1 %v1373_v34  ;;  %v783_v25 = vmax.f32 %v763_v18, 0.0 }
 0x26a   :  { %v758_v24 = vadd.f32 %v923_v38, %v757_v23  ;;  %v781_v27 = vmax.f32 %v755_v20, 0.0 }
 0x26b   :  { %v784_v26 = vmax.f32 %v766_v22, 0.0 }
 0x26c   :  { %v782_v28 = vmax.f32 %v758_v24, 0.0 }
 0x26d   :  { %v1151_v29 = vpack.c.bf16 %v784_v26, %v783_v25 }
 0x26e   :  { %v1148_v30 = vpack.c.bf16 %v782_v28, %v781_v27 }
 0x270   :  { %1140 = vmatpush3.bf16.xpose.msra.mxu1 %v1139_v1 }
 0x271   :  { %1141 = vmatprep.subr.bf16.mxu1 %v1373_v34 }
 0x278   :  { %1143 = vmatpush3.bf16.xpose.msra.mxu1 %v1142_v16 }
 0x279   :  { %1144 = vmatprep.subr.bf16.mxu1 %v1373_v34 }
 0x280   :  { %1146 = vmatpush3.bf16.xpose.msra.mxu1 %v1145_v15 }
 0x281   :  { %1147 = vmatprep.subr.bf16.mxu1 %v1373_v34 }
 0x288   :  { %1149 = vmatpush3.bf16.xpose.msra.mxu1 %v1148_v30 }
 0x289   :  { %1150 = vmatprep.subr.bf16.mxu1 %v1373_v34 }
 0x290   :  { %1152 = vmatpush3.bf16.xpose.msra.mxu1 %v1151_v29 }
 0x297   :  { %1127 = vmatmul.mubr.f32.vlgmr.msra.gmra.mrb[16].mxu1 %v785_v31 }
 0x36a   :  { %v862_v38 = vpop.f32.mrb[16].mxu1 }
 0x36b   :  { %v863_v39 = vadd.f32 %v862_v38, %v795_v37  ;;  %v1128_v40 = vpop.f32.mrb[17].mxu1 }
 0x36d   :  { %v932_v41 = vmul.f32 -1.442695, %v863_v39 }
 0x36f   :  { %1222 = vpow2.f32 %v932_v41 }
 0x379   :  { %v1223_v42 = vpop.eup %1222 }
 0x37a   :  { %v869_v43 = vadd.f32 1.0, %v1223_v42 }
 0x37c   :  { %1224 = vrcp.f32 %v869_v43 }
 0x386   :  { %v1225_v34 = vpop.eup %1224 }
 0x387   :  { %872 = vst [vmem:[#allocation12] sm:$0x1] %v1225_v34 }
 0x388   :  { %1347 = shalt.err (!%p1344_p2)
}
 0x389   :  { %s1348_s11 = scalar_lea.hbm %s1558_s9, 16 }
 0x38a   :  { %p1349_p3 = scmp.ne.s32.totalorder %s1558_s9, %s1348_s11  ;;  %p1352_p4 = scmp.lt.u32.totalorder %s1348_s11, %s1558_s9 }
 0x38c   :  { %p1354_p5 = pnand %p1352_p4, %p1349_p3 }
 0x38e   :  { %1357 = shalt.err (!%p1354_p5)
}
 0x38f   :  { %882 = dma.vmem_to_hbm [thread:$0]  %s880_s28, 16, %s1558_s9, [#allocation5]  }
 0x390   :  { %1364 = dma.done.wait [#allocation5], 16  }
 0x391   :  { %1365 = vsyncadd [#allocation5], 4294967280 }
 0x392   :  { %886 = vsyncpa [#allocation4], 1 }
 0x393   :  { %887 = vsyncpa [#allocation7], 1 }
 0x394   :  { %888 = vsyncpa [#allocation10], 1 }
 0x395   :  { %889 = vsyncpa [#allocation5], 1 }

</bundles_post_ra>
